<compile_context>
chip_gen: v6e
topology: v6e:2x2x1
jax: 0.10.0
libtpu: 0.0.40
codegen_flags: <defaults>
</compile_context>

<pallas_src>
import jax
import jax.numpy as jnp
from jax.experimental import pallas as pl
from jax.experimental.pallas import tpu as pltpu

LANE = 128
SUBLANE = 8


def _round_up(x, m):
    return (x + m - 1) // m * m


def _disc_kernel(x_ref, w1_ref, b1_ref, w2_ref, b2_ref, w3_ref, b3_ref, o_ref):
    # x arrives straight from HBM (f32, unpadded feature dim); cast to bf16
    # here so the MXU gets bf16 operands without an extra XLA pad/cast pass.
    x = x_ref[...].astype(jnp.bfloat16)

    h1 = jnp.dot(x, w1_ref[...], preferred_element_type=jnp.float32)
    h1 = jnp.maximum(h1 + b1_ref[...], 0.0)

    h2 = jnp.dot(h1.astype(jnp.bfloat16), w2_ref[...],
                 preferred_element_type=jnp.float32)
    h2 = jnp.maximum(h2 + b2_ref[...], 0.0)

    logits = jnp.dot(h2.astype(jnp.bfloat16), w3_ref[...],
                     preferred_element_type=jnp.float32)
    logits = logits + b3_ref[...]

    # Narrow (tb, out_dim) store: a few masked vst, but ~128x fewer output
    # bytes than a lane-padded slab (the kernel is memory-bound).
    o_ref[...] = jax.nn.sigmoid(logits).astype(o_ref.dtype)


def _choose_batch_tiling(batch, block_b):
    """Pick (batch-tile rows, number of tiles).

    * Tiles are sublane-aligned (8); large tiles start MXU-M aligned
      (128 on v5e, 256 on v6e/v7x).
    * When more than one tile is needed, the tile count is kept EVEN so the
      "parallel" batch axis splits evenly across v7x's two TensorCores, and the
      tile size is re-balanced (sublane granularity) to minimize zero-padding
      work — on a mem-bound kernel low padding beats strict MXU-M alignment.
    """
    block_b = max(SUBLANE, int(block_b))
    if batch <= block_b:
        # Single big tile (good for v6e's large VMEM / 256-wide MXU passes).
        return _round_up(batch, SUBLANE), 1

    if block_b >= 256:
        align = 256
    elif block_b >= 128:
        align = 128
    else:
        align = SUBLANE

    tb = _round_up(block_b, align)
    n = pl.cdiv(batch, tb)
    if n > 1 and n % 2 == 1:
        n += 1
    # Re-balance tile size to the chosen (even) tile count.
    tb = _round_up(pl.cdiv(batch, n), SUBLANE)
    n = pl.cdiv(batch, tb)
    if n > 1 and n % 2 == 1:
        n += 1  # one extra (cheap, all-padding) tile keeps both TCs busy
    return tb, n


def _resident_spec(shape, single_buffer):
    """Constant index_map => block stays VMEM-resident across batch tiles."""
    index_map = lambda i: (0, 0)
    if single_buffer and hasattr(pl, "Buffered"):
        # v7x (64 MiB VMEM): don't double-buffer blocks that never change.
        try:
            return pl.BlockSpec(shape, index_map, pipeline_mode=pl.Buffered(1))
        except TypeError:
            pass  # older API: fall back to the default pipelining
    return pl.BlockSpec(shape, index_map)


def discriminator_forward(x, params, *, block_b=512, vmem_limit_bytes=None,
                          single_buffer_weights=False):
    """x: (B, input_dim) float32.
    params: weights in (in_features, out_features) layout, biases (1, out)."""
    w1, b1 = params["w1"], params["b1"]
    w2, b2 = params["w2"], params["b2"]
    w3, b3 = params["w3"], params["b3"]

    B, d_in = x.shape
    hidden = w1.shape[1]
    out_dim = w3.shape[1]

    tb, n_tiles = _choose_batch_tiling(B, block_b)
    b_p = tb * n_tiles

    bf16, f32 = jnp.bfloat16, jnp.float32
    # Weights are tiny: cast to bf16 once (halves their resident VMEM + DMA).
    # Activations are NOT copied / padded / cast in HBM.
    w1_b, w2_b, w3_b = (w.astype(bf16) for w in (w1, w2, w3))
    b1_f, b2_f, b3_f = (b.astype(f32) for b in (b1, b2, b3))

    x_in = x if b_p == B else jnp.pad(x, ((0, b_p - B), (0, 0)))

    if vmem_limit_bytes is None:
        # Budget = weights (+biases) x buffer count + double-buffered x/out
        # tiles + f32/bf16 intermediates; 2x headroom, 8 MiB floor, 128 MiB cap.
        w_bytes = (w1_b.size + w2_b.size + w3_b.size) * 2
        bias_bytes = (b1_f.size + b2_f.size + b3_f.size) * 4
        n_w_bufs = 1 if single_buffer_weights else 2
        io_bytes = 2 * tb * d_in * 4 + 2 * tb * out_dim * 4
        inter_bytes = tb * (2 * hidden * 4 + 2 * hidden * 2 + d_in * 2 + out_dim * 4)
        vmem_limit_bytes = min(
            128 * 1024 * 1024,
            max(2 * (n_w_bufs * (w_bytes + bias_bytes) + io_bytes + inter_bytes),
                8 * 1024 * 1024))

    # True post-optimization HBM traffic (advisory for XLA scheduling).
    flops = 2 * B * (d_in * hidden + hidden * hidden + hidden * out_dim)
    bytes_accessed = (B * d_in * 4
                      + (w1_b.size + w2_b.size + w3_b.size) * 2
                      + (b1_f.size + b2_f.size + b3_f.size) * 4
                      + b_p * out_dim * 4)
    cost = pl.CostEstimate(flops=flops, transcendentals=B * out_dim,
                           bytes_accessed=bytes_accessed)

    out = pl.pallas_call(
        _disc_kernel,
        out_shape=jax.ShapeDtypeStruct((b_p, out_dim), f32),
        grid=(n_tiles,),
        in_specs=[
            # x: full (unpadded) feature dim; cast to bf16 inside the kernel.
            pl.BlockSpec((tb, d_in), lambda i: (i, 0)),
            _resident_spec(w1_b.shape, single_buffer_weights),
            _resident_spec(b1_f.shape, single_buffer_weights),
            _resident_spec(w2_b.shape, single_buffer_weights),
            _resident_spec(b2_f.shape, single_buffer_weights),
            _resident_spec(w3_b.shape, single_buffer_weights),
            _resident_spec(b3_f.shape, single_buffer_weights),
        ],
        # Narrow output block (full last dim == out_dim): no 128-lane padding,
        # no wrapper slice pass over a padded slab.
        out_specs=pl.BlockSpec((tb, out_dim), lambda i: (i, 0)),
        compiler_params=pltpu.CompilerParams(
            dimension_semantics=("parallel",),
            vmem_limit_bytes=int(vmem_limit_bytes),
        ),
        cost_estimate=cost,
    )(x_in, w1_b, b1_f, w2_b, b2_f, w3_b, b3_f)

    return out if b_p == B else out[:B]


def init_params(key, input_dim, hidden_dim, output_dim):
    """Deterministic init mimicking torch nn.Linear default (uniform +-1/sqrt(fan_in)).
    Weights stored transposed: (in_features, out_features)."""
    ks = jax.random.split(key, 6)

    def linear(kw, kb, fan_in, fan_out):
        bound = 1.0 / jnp.sqrt(fan_in)
        w = jax.random.uniform(kw, (fan_in, fan_out), jnp.float32, -bound, bound)
        b = jax.random.uniform(kb, (1, fan_out), jnp.float32, -bound, bound)
        return w, b

    w1, b1 = linear(ks[0], ks[1], input_dim, hidden_dim)
    w2, b2 = linear(ks[2], ks[3], hidden_dim, hidden_dim)
    w3, b3 = linear(ks[4], ks[5], hidden_dim, output_dim)
    return {"w1": w1, "b1": b1, "w2": w2, "b2": b2, "w3": w3, "b3": b3}


def _reference_forward_bf16(x, p):
    """Same math as the kernel: bf16 MXU operands, f32 accumulation/elementwise."""
    bf16 = jnp.bfloat16
    h1 = jnp.maximum(
        jnp.dot(x.astype(bf16), p["w1"].astype(bf16),
                preferred_element_type=jnp.float32) + p["b1"], 0.0)
    h2 = jnp.maximum(
        jnp.dot(h1.astype(bf16), p["w2"].astype(bf16),
                preferred_element_type=jnp.float32) + p["b2"], 0.0)
    logits = jnp.dot(h2.astype(bf16), p["w3"].astype(bf16),
                     preferred_element_type=jnp.float32) + p["b3"]
    return jax.nn.sigmoid(logits)


def _reference_forward_f32(x, p):
    h1 = jnp.maximum(x @ p["w1"] + p["b1"], 0.0)
    h2 = jnp.maximum(h1 @ p["w2"] + p["b2"], 0.0)
    return jax.nn.sigmoid(h2 @ p["w3"] + p["b3"])


if __name__ == "__main__":
    key = jax.random.PRNGKey(0)
    k_x1, k_p1, k_x2, k_p2 = jax.random.split(key, 4)

    # Case 1: toy shapes matching the original module spec (single tile).
    batch, input_dim, hidden_dim, output_dim = 8, 16, 32, 1
    x = jax.random.normal(k_x1, (batch, input_dim), dtype=jnp.float32)
    params = init_params(k_p1, input_dim, hidden_dim, output_dim)

    out = jax.block_until_ready(discriminator_forward(x, params))
    assert out.shape == (batch, output_dim)
    assert jnp.allclose(out, _reference_forward_bf16(x, params), atol=1e-3, rtol=1e-3)
    assert jnp.allclose(out, _reference_forward_f32(x, params), atol=2e-2, rtol=2e-2)

    # Case 2: multiple batch tiles + batch padding + even-tile-count logic.
    batch2, input_dim2, hidden_dim2, output_dim2 = 300, 64, 128, 1
    x2 = jax.random.normal(k_x2, (batch2, input_dim2), dtype=jnp.float32)
    params2 = init_params(k_p2, input_dim2, hidden_dim2, output_dim2)

    out2 = jax.block_until_ready(discriminator_forward(x2, params2, block_b=128))
    assert out2.shape == (batch2, output_dim2)
    assert jnp.allclose(out2, _reference_forward_bf16(x2, params2), atol=1e-3, rtol=1e-3)
    assert jnp.allclose(out2, _reference_forward_f32(x2, params2), atol=2e-2, rtol=2e-2)

    print("KERNEL_OK")
</pallas_src>

<mosaic_0001>
module attributes {stable_mosaic.version = 11 : i64} {
  func.func @_disc_kernel(%arg0: i32, %arg1: memref<8x16xf32, #tpu.memory_space<vmem>>, %arg2: memref<16x32xbf16, #tpu.memory_space<vmem>>, %arg3: memref<1x32xf32, #tpu.memory_space<vmem>>, %arg4: memref<32x32xbf16, #tpu.memory_space<vmem>>, %arg5: memref<1x32xf32, #tpu.memory_space<vmem>>, %arg6: memref<32x1xbf16, #tpu.memory_space<vmem>>, %arg7: memref<1x1xf32, #tpu.memory_space<vmem>>, %arg8: memref<8x1xf32, #tpu.memory_space<vmem>>) attributes {dimension_semantics = [#tpu.dimension_semantics<parallel>], iteration_bounds = array<i64: 1>, scalar_prefetch = 0 : i64, scratch_operands = 0 : i64, tpu.core_type = #tpu.core_type<tc>, window_params = [{transform_indices = @transform_0, window_bounds = array<i64: 8, 16>}, {pipeline_mode = #tpu.pipeline_mode<synchronous>, transform_indices = @transform_1, window_bounds = array<i64: 16, 32>}, {pipeline_mode = #tpu.pipeline_mode<synchronous>, transform_indices = @transform_2, window_bounds = array<i64: 1, 32>}, {pipeline_mode = #tpu.pipeline_mode<synchronous>, transform_indices = @transform_3, window_bounds = array<i64: 32, 32>}, {pipeline_mode = #tpu.pipeline_mode<synchronous>, transform_indices = @transform_4, window_bounds = array<i64: 1, 32>}, {pipeline_mode = #tpu.pipeline_mode<synchronous>, transform_indices = @transform_5, window_bounds = array<i64: 32, 1>}, {pipeline_mode = #tpu.pipeline_mode<synchronous>, transform_indices = @transform_6, window_bounds = array<i64: 1, 1>}, {transform_indices = @transform_7, window_bounds = array<i64: 8, 1>}]} {
    %c0 = arith.constant 0 : index
    %c0_0 = arith.constant 0 : index
    %0 = vector.load %arg1[%c0, %c0_0] : memref<8x16xf32, #tpu.memory_space<vmem>>, vector<8x16xf32>
    %1 = arith.truncf %0 : vector<8x16xf32> to vector<8x16xbf16>
    %c0_1 = arith.constant 0 : index
    %c0_2 = arith.constant 0 : index
    %2 = vector.load %arg2[%c0_1, %c0_2] : memref<16x32xbf16, #tpu.memory_space<vmem>>, vector<16x32xbf16>
    %cst = arith.constant dense<0.000000e+00> : vector<8x32xf32>
    %3 = tpu.matmul %1, %2, %cst {dimension_numbers = #tpu.dot_dimension_numbers<[1], [0], [0], [1], [0, 0, 1, 1], [], []>} : vector<8x16xbf16>, vector<16x32xbf16>, vector<8x32xf32> -> vector<8x32xf32>
    %c0_3 = arith.constant 0 : index
    %c0_4 = arith.constant 0 : index
    %4 = vector.load %arg3[%c0_3, %c0_4] : memref<1x32xf32, #tpu.memory_space<vmem>>, vector<1x32xf32>
    %5 = vector.broadcast %4 : vector<1x32xf32> to vector<8x32xf32>
    %6 = arith.addf %3, %5 : vector<8x32xf32>
    %cst_5 = arith.constant 0.000000e+00 : f32
    %7 = vector.broadcast %cst_5 : f32 to vector<8x32xf32>
    %8 = arith.maximumf %6, %7 : vector<8x32xf32>
    %9 = arith.truncf %8 : vector<8x32xf32> to vector<8x32xbf16>
    %c0_6 = arith.constant 0 : index
    %c0_7 = arith.constant 0 : index
    %10 = vector.load %arg4[%c0_6, %c0_7] : memref<32x32xbf16, #tpu.memory_space<vmem>>, vector<32x32xbf16>
    %cst_8 = arith.constant dense<0.000000e+00> : vector<8x32xf32>
    %11 = tpu.matmul %9, %10, %cst_8 {dimension_numbers = #tpu.dot_dimension_numbers<[1], [0], [0], [1], [0, 0, 1, 1], [], []>} : vector<8x32xbf16>, vector<32x32xbf16>, vector<8x32xf32> -> vector<8x32xf32>
    %c0_9 = arith.constant 0 : index
    %c0_10 = arith.constant 0 : index
    %12 = vector.load %arg5[%c0_9, %c0_10] : memref<1x32xf32, #tpu.memory_space<vmem>>, vector<1x32xf32>
    %13 = vector.broadcast %12 : vector<1x32xf32> to vector<8x32xf32>
    %14 = arith.addf %11, %13 : vector<8x32xf32>
    %cst_11 = arith.constant 0.000000e+00 : f32
    %15 = vector.broadcast %cst_11 : f32 to vector<8x32xf32>
    %16 = arith.maximumf %14, %15 : vector<8x32xf32>
    %17 = arith.truncf %16 : vector<8x32xf32> to vector<8x32xbf16>
    %c0_12 = arith.constant 0 : index
    %c0_13 = arith.constant 0 : index
    %18 = vector.load %arg6[%c0_12, %c0_13] : memref<32x1xbf16, #tpu.memory_space<vmem>>, vector<32x1xbf16>
    %cst_14 = arith.constant dense<0.000000e+00> : vector<8x1xf32>
    %19 = tpu.matmul %17, %18, %cst_14 {dimension_numbers = #tpu.dot_dimension_numbers<[1], [0], [0], [1], [0, 0, 1, 1], [], []>} : vector<8x32xbf16>, vector<32x1xbf16>, vector<8x1xf32> -> vector<8x1xf32>
    %c0_15 = arith.constant 0 : index
    %c0_16 = arith.constant 0 : index
    %20 = vector.load %arg7[%c0_15, %c0_16] : memref<1x1xf32, #tpu.memory_space<vmem>>, vector<1x1xf32>
    %21 = vector.broadcast %20 : vector<1x1xf32> to vector<8x1xf32>
    %22 = arith.addf %19, %21 : vector<8x1xf32>
    %23 = arith.negf %22 : vector<8x1xf32>
    %24 = math.exp %23 : vector<8x1xf32>
    %cst_17 = arith.constant 1.000000e+00 : f32
    %25 = vector.broadcast %cst_17 : f32 to vector<8x1xf32>
    %26 = arith.addf %25, %24 : vector<8x1xf32>
    %27 = arith.divf %25, %26 : vector<8x1xf32>
    %c0_18 = arith.constant 0 : index
    %c0_19 = arith.constant 0 : index
    %28 = vector.load %arg8[%c0_18, %c0_19] : memref<8x1xf32, #tpu.memory_space<vmem>>, vector<8x1xf32>
    tpu.vector_store %arg8[%c0_18, %c0_19], %27 {strides = array<i32>} : memref<8x1xf32, #tpu.memory_space<vmem>>, vector<8x1xf32>,
    return
  }
  func.func @transform_0(%arg0: i32) -> (i32, i32) {
    %c0_i32 = arith.constant 0 : i32
    %c0_i32_0 = arith.constant 0 : i32
    return %arg0, %c0_i32 : i32, i32
  }
  func.func @transform_1(%arg0: i32) -> (i32, i32) {
    %c0_i32 = arith.constant 0 : i32
    %c0_i32_0 = arith.constant 0 : i32
    %c0_i32_1 = arith.constant 0 : i32
    return %c0_i32, %c0_i32_0 : i32, i32
  }
  func.func @transform_2(%arg0: i32) -> (i32, i32) {
    %c0_i32 = arith.constant 0 : i32
    %c0_i32_0 = arith.constant 0 : i32
    %c0_i32_1 = arith.constant 0 : i32
    return %c0_i32, %c0_i32_0 : i32, i32
  }
  func.func @transform_3(%arg0: i32) -> (i32, i32) {
    %c0_i32 = arith.constant 0 : i32
    %c0_i32_0 = arith.constant 0 : i32
    %c0_i32_1 = arith.constant 0 : i32
    return %c0_i32, %c0_i32_0 : i32, i32
  }
  func.func @transform_4(%arg0: i32) -> (i32, i32) {
    %c0_i32 = arith.constant 0 : i32
    %c0_i32_0 = arith.constant 0 : i32
    %c0_i32_1 = arith.constant 0 : i32
    return %c0_i32, %c0_i32_0 : i32, i32
  }
  func.func @transform_5(%arg0: i32) -> (i32, i32) {
    %c0_i32 = arith.constant 0 : i32
    %c0_i32_0 = arith.constant 0 : i32
    %c0_i32_1 = arith.constant 0 : i32
    return %c0_i32, %c0_i32_0 : i32, i32
  }
  func.func @transform_6(%arg0: i32) -> (i32, i32) {
    %c0_i32 = arith.constant 0 : i32
    %c0_i32_0 = arith.constant 0 : i32
    %c0_i32_1 = arith.constant 0 : i32
    return %c0_i32, %c0_i32_0 : i32, i32
  }
  func.func @transform_7(%arg0: i32) -> (i32, i32) {
    %c0_i32 = arith.constant 0 : i32
    %c0_i32_0 = arith.constant 0 : i32
    return %arg0, %c0_i32 : i32, i32
  }
}

</mosaic_0001>

<bundles_post_ra>
// kernel: tpu_custom_call.1
= control target key start
LH: loop header
LB: loop body
LE: loop exit
PB: predicated region body
PF: predicated region fallthrough
CT: control target
= control target key end

     0   :  { %s444_s0 = inlined_call_operand.vmem [shape: f32[8,16], index: 0, kind: input, shape index: {}]   ;;  %s445_s1 = inlined_call_operand.hbm [shape: bf16[16,32], index: 1, kind: input, shape index: {}]   ;;  %s446_s2 = inlined_call_operand.hbm [shape: f32[1,32], index: 2, kind: input, shape index: {}]   ;;  %s447_s3 = inlined_call_operand.vmem [shape: bf16[32,32], index: 3, kind: input, shape index: {}]   ;;  %s448_s4 = inlined_call_operand.vmem [shape: f32[1,32], index: 4, kind: input, shape index: {}]   ;;  %s449_s5 = inlined_call_operand.vmem [shape: bf16[32,1], index: 5, kind: input, shape index: {}]   ;;  %s450_s6 = inlined_call_operand.<no memory space> [shape: f32[1,1], index: 6, kind: input, shape index: {}]   ;;  %s451_s7 = inlined_call_operand.vmem [shape: f32[8,1], index: 7, kind: output, shape index: {}]  }
   0x1   :  { %v12_v0 = vstv %s450_s6 }
   0x2   :  { %13 = vst [vmem:[#allocation2] sm:$0x1] %v12_v0 }
   0x3   :  { %14 = vsyncpa [#allocation4], 0 }
   0x4   :  { %15 = vsyncpa [#allocation6], 0  ;;  %s368_s26 = smov [#allocation3]  }
   0x5   :  { %s23_s27 = sshll.u32 %s368_s26, 4  ;;  %s24_s27 = int_to_ptr.vmem [resolvable:$true] %s23_s27 }
   0x6   :  { %s332_s28 = scalar_lea.vmem %s24_s27, 128  ;;  %p337_p1 = scmp.lt.s32.totalorder %s24_s27, %s24_s27 }
   0x7   :  { %p333_p0 = scmp.ne.s32.totalorder %s24_s27, %s332_s28  ;;  %p338_p2 = scmp.lt.s32.totalorder %s332_s28, %s332_s28 }
   0x9   :  { %p339_p3 = por %p338_p2, %p337_p1 }
   0xb   :  { %p340_p4 = pnand %p339_p3, %p333_p0 }
   0xd   :  { %343 = shalt.err (!%p340_p4)
}
   0xe   :  { %s369_s29 = smov 64   ;;  %s370_s30 = smov 4  }
   0xf   :  { %29 = dma.hbm_to_vmem [thread:$0]  %s445_s1, 128, %s24_s27, [#allocation4], %s369_s29, %s369_s29, %s370_s30  }
  0x10   :  { %s371_s6 = smov [#allocation5]  }
  0x11   :  { %s36_s10 = sshll.u32 %s371_s6, 4  ;;  %s37_s10 = int_to_ptr.vmem [resolvable:$true] %s36_s10 }
  0x12   :  { %s352_s11 = scalar_lea.vmem %s37_s10, 16  ;;  %s356_s12 = scalar_lea.vmem %s37_s10, 32 }
  0x13   :  { %p353_p5 = scmp.ne.s32.totalorder %s37_s10, %s352_s11  ;;  %p357_p6 = scmp.lt.s32.totalorder %s37_s10, %s37_s10 }
  0x14   :  { %p358_p7 = scmp.lt.s32.totalorder %s356_s12, %s352_s11 }
  0x16   :  { %p359_p8 = por %p358_p7, %p357_p6 }
  0x18   :  { %p360_p9 = pnand %p359_p8, %p353_p5 }
  0x1a   :  { %363 = shalt.err (!%p360_p9)
}
  0x1b   :  { %39 = dma.hbm_to_vmem [thread:$0]  %s446_s2, 16, %s37_s10, [#allocation6]  }
  0x1c   :  { %364 = dma.done.wait [#allocation4], 128  }
  0x1d   :  { %365 = vsyncadd [#allocation4], 4294967168 }
  0x1e   :  { %366 = dma.done.wait [#allocation6], 16  }
  0x1f   :  { %367 = vsyncadd [#allocation6], 4294967280  ;;  %v372_v1 = vmov 0.0   ;;  %vm373_vm0 = vmmov 0   ;;  %v315_v2 = vld [vmem:[#allocation3] sm:$0xff]   ;;  %vm72_vm1 = vcmask 130048  }
  0x20   :  { %287 = vmatprep.subr.bf16.mxu0 %v372_v1  ;;  %289 = vmatprep.mubr.msk.bf16.mxu0 %vm373_vm0, %v372_v1  ;;  %v55_v3 = vld [vmem:[%s444_s0] sm:$0xff]  ;;  %v316_v5 = vld [vmem:[%s447_s3 + $0x8] sm:$0xff]   ;;  %vm141_vm2 = vcmask 261120   ;;  %vm259_vm3 = vcmask 7168  }
  0x21   :  { %293 = vmatprep.subr.bf16.mxu1 %v372_v1  ;;  %297 = vmatprep.mubr.msk.bf16.mxu1 %vm373_vm0, %v372_v1  ;;  %v56_v4 = vpack.c.bf16 %v55_v3, %v55_v3  ;;  %v317_v6 = vld [vmem:[%s447_s3] sm:$0xff]   ;;  %v318_v7 = vld [vmem:[%s449_s5 + $0x8] sm:$0xff]  }
  0x22   :  { %288 = vmatpush3.bf16.msra.mxu0 %v315_v2  ;;  %294 = vmatpush3.bf16.msra.mxu1 %v316_v5  ;;  %v267_v8 = vld [vmem:[#allocation5] ss:$0 sm:$0xff]  ;;  %v319_v16 = vld [vmem:[%s449_s5] sm:$0xff]  }
  0x23   :  { %301 = vmatprep.subr.bf16.mxu0 %v372_v1  ;;  %295 = vmatprep.subr.bf16.mxu1 %v372_v1  ;;  %v270_v17 = vld [vmem:[%s448_s4] ss:$0 sm:$0xff] }
  0x24   :  { %v274_v25 = vld [vmem:[#allocation2] ss:$0 sm:$0xff] }
  0x25   :  { %290 = vmatmul.mubr.msk.bf16.vlgmr.msra.gmra.mxu0 %vm72_vm1, %v56_v4 }
  0x26   :  { %305 = vmatprep.mubr.msk.bf16.mxu0 %vm373_vm0, %v372_v1  ;;  %296 = vmatpush3.bf16.msra.mxu1 %v317_v6 }
  0x27   :  { %302 = vmatpush3.bf16.msra.mxu0 %v318_v7 }
  0x28   :  { %303 = vmatprep.subr.bf16.mxu0 %v372_v1 }
  0x2b   :  { %304 = vmatpush3.bf16.msra.mxu0 %v319_v16 }
  0xe5   :  { %v110_v9 = vpop.f32.mrf.mxu0 }
  0xe6   :  { %v111_v10 = vadd.f32 %v267_v8, %v110_v9 }
  0xe7   :  { %v291_v11 = vpop.f32.mrf.mxu0 }
  0xe8   :  { %v116_v12 = vmax.f32 %v111_v10, 0.0 }
  0xe9   :  { %v113_v13 = vpop.f32.mrf.mxu0 }
  0xea   :  { %v117_v14 = vpack.c.bf16 %v116_v12, %v116_v12 }
  0xeb   :  { %v292_v15 = vpop.f32.mrf.mxu0 }
  0xec   :  { %298 = vmatmul.mubr.msk.bf16.vlgmr.msra.gmra.mxu1 %vm141_vm2, %v117_v14 }
 0x1ac   :  { %v179_v18 = vpop.f32.mrf.mxu1 }
 0x1ad   :  { %v180_v19 = vadd.f32 %v270_v17, %v179_v18 }
 0x1ae   :  { %v299_v20 = vpop.f32.mrf.mxu1 }
 0x1af   :  { %v185_v21 = vmax.f32 %v180_v19, 0.0 }
 0x1b0   :  { %v182_v22 = vpop.f32.mrf.mxu1 }
 0x1b1   :  { %v186_v23 = vpack.c.bf16 %v185_v21, %v185_v21 }
 0x1b2   :  { %v300_v24 = vpop.f32.mrf.mxu1 }
 0x1b3   :  { %306 = vmatmul.mubr.msk.bf16.vlgmr.msra.gmra.mxu0 %vm141_vm2, %v186_v23 }
 0x273   :  { %v247_v26 = vpop.f32.mrf.mxu0 }
 0x274   :  { %v248_v27 = vadd.f32 %v274_v25, %v247_v26 }
 0x275   :  { %v307_v28 = vpop.f32.mrf.mxu0 }
 0x276   :  { %v278_v29 = vmul.f32 -1.442695, %v248_v27 }
 0x277   :  { %v250_v30 = vpop.f32.mrf.mxu0 }
 0x278   :  { %320 = vpow2.f32 %v278_v29 }
 0x279   :  { %v308_v31 = vpop.f32.mrf.mxu0 }
 0x285   :  { %v321_v32 = vpop.eup %320 }
 0x286   :  { %v256_v33 = vadd.f32 1.0, %v321_v32 }
 0x288   :  { %322 = vrcp.f32 %v256_v33 }
 0x295   :  { %v323_v34 = vpop.eup %322 }
 0x296   :  { %260 = vst.msk [vmem:[%s451_s7] sm:$0xff] %vm259_vm3, %v323_v34 }
 0x297   :  { %265 = vsyncpa [#allocation4], 1 }
 0x298   :  { %266 = vsyncpa [#allocation6], 1 }

</bundles_post_ra>
